<compile_context>
chip_gen: v7x
topology: tpu7x:2x2x1
jax: 0.10.0
libtpu: 0.0.40
codegen_flags: <defaults>
</compile_context>

<pallas_src>
import jax
import jax.numpy as jnp
from jax.experimental import pallas as pl
from jax.experimental.pallas import tpu as pltpu


def _nocs_head_kernel(x_ref, m_ref, w1_ref, b1_ref, w2_ref, b2_ref,
                      w3_ref, b3_ref, o_ref):
    # x_ref : (1, 32, TN)  features (channels on sublanes, N on lanes; bf16 preferred)
    # m_ref : (1, 1, TN)   mask (narrow dtype; cast to f32 in-kernel)
    # w1_ref: (16, 32) bf16   b1_ref: (16, 1) f32
    # w2_ref: (8, 16)  bf16   b2_ref: (8, 1)  f32
    # w3_ref: (3, 8)   bf16   b3_ref: (3, 1)  f32
    # o_ref : (1, 3, TN)   lane-dense along N
    x = x_ref[0].astype(jnp.bfloat16)                                   # (32, TN)
    m = m_ref[0].astype(jnp.float32)                                    # (1,  TN)

    # Mask is a per-position scalar -> apply it after the first matmul
    # (16 rows of VPU mul instead of 32; exact for binary masks).
    h1 = jnp.dot(w1_ref[...], x, preferred_element_type=jnp.float32) * m + b1_ref[...]
    h1 = jnp.maximum(h1, 0.0).astype(jnp.bfloat16)                      # (16, TN)
    h2 = jnp.dot(w2_ref[...], h1, preferred_element_type=jnp.float32) + b2_ref[...]
    h2 = jnp.maximum(h2, 0.0).astype(jnp.bfloat16)                      # (8, TN)
    h3 = jnp.dot(w3_ref[...], h2, preferred_element_type=jnp.float32) + b3_ref[...]
    o_ref[0] = h3.astype(o_ref.dtype)                                   # (3, TN)


def _min_grid_steps():
    """Minimum number of grid steps before we shrink tiles for parallelism.

    v7x has 2 TensorCores per chip: megacore sharding + 2-deep pipelining per
    core wants >= ~8 steps. Single-TC chips (v5e/v6e) gain nothing from extra
    grid steps, so never shrink there. Best-effort detection; safe fallback."""
    try:
        info = pltpu.get_tpu_info()
        for attr in ("num_tensorcores", "tensor_cores_per_chip", "num_cores",
                     "cores_per_chip"):
            v = getattr(info, attr, None)
            if isinstance(v, int) and v >= 2:
                return 4 * v
    except Exception:
        pass
    return 2


def _pick_tile_n(batch, n_pad, cap=8192):
    """Largest 128-multiple tile (<= cap) dividing the (padded) N; shrink only
    if a multi-TensorCore chip would otherwise starve for grid steps."""
    cap = min(cap, n_pad)
    tile = 128
    for cand in range(cap - cap % 128, 127, -128):
        if n_pad % cand == 0:
            tile = cand
            break
    min_steps = _min_grid_steps()
    while batch * (n_pad // tile) < min_steps and tile % 256 == 0:
        tile //= 2
    return tile


def nocs_head(features, mask, params, *, tile_n=None, out_dtype=None):
    """features: (B, 32, H, W), ideally bf16 (streamed as-is); mask: (B, H, W)
    or (B, 1, H, W) in any dtype (binary).  Returns nocs_map (B, 3, H, W) in
    `out_dtype` (default: features.dtype), matching NocsNetwork.forward after
    the backbone feature extractor."""
    B, C, H, W = features.shape
    assert C == 32
    N = H * W
    N_pad = ((N + 127) // 128) * 128
    if out_dtype is None:
        out_dtype = features.dtype

    # Layout glue is reshape-only (channels stay on sublanes); no dtype
    # up-casts in the wrapper.  Non-floating masks are widened once to bf16
    # (2 B/pixel) so the kernel sees a clean vector dtype.
    x = features.reshape(B, C, N)
    m = mask.reshape(B, 1, N)
    if not jnp.issubdtype(m.dtype, jnp.floating):
        m = m.astype(jnp.bfloat16)
    if N_pad != N:
        # Zero-pad N to a 128 multiple; padded columns are masked out and the
        # output is sliced back, keeping all tiles bounded and lane-dense.
        x = jnp.pad(x, ((0, 0), (0, 0), (0, N_pad - N)))
        m = jnp.pad(m, ((0, 0), (0, 0), (0, N_pad - N)))

    if tile_n is None:
        tile_n = _pick_tile_n(B, N_pad)
    assert N_pad % tile_n == 0 and tile_n % 128 == 0

    w1, b1 = params["w1"], params["b1"]   # (16, 32) bf16, (16, 1) f32
    w2, b2 = params["w2"], params["b2"]   # (8, 16)  bf16, (8, 1)  f32
    w3, b3 = params["w3"], params["b3"]   # (3, 8)   bf16, (3, 1)  f32

    # Weights/biases are grid-invariant (<10 KB total): constant index maps
    # keep the blocks resident in VMEM, no per-step re-copies.
    inv = lambda a: pl.BlockSpec(a.shape, lambda b, n: (0,) * a.ndim)

    cost = pl.CostEstimate(
        flops=2 * B * N_pad * (32 * 16 + 16 * 8 + 8 * 3),
        transcendentals=0,
        bytes_accessed=int(x.size) * x.dtype.itemsize
        + int(m.size) * m.dtype.itemsize
        + B * 3 * N_pad * jnp.dtype(out_dtype).itemsize
        + sum(int(a.size) * a.dtype.itemsize for a in (w1, b1, w2, b2, w3, b3)),
    )

    out = pl.pallas_call(
        _nocs_head_kernel,
        out_shape=jax.ShapeDtypeStruct((B, 3, N_pad), out_dtype),
        grid_spec=pltpu.PrefetchScalarGridSpec(
            num_scalar_prefetch=0,
            grid=(B, N_pad // tile_n),
            in_specs=[
                pl.BlockSpec((1, C, tile_n), lambda b, n: (b, 0, n)),
                pl.BlockSpec((1, 1, tile_n), lambda b, n: (b, 0, n)),
                inv(w1), inv(b1), inv(w2), inv(b2), inv(w3), inv(b3),
            ],
            out_specs=pl.BlockSpec((1, 3, tile_n), lambda b, n: (b, 0, n)),
        ),
        compiler_params=pltpu.CompilerParams(
            dimension_semantics=("parallel", "parallel")),
        cost_estimate=cost,
    )(x, m, w1, b1, w2, b2, w3, b3)

    if N_pad != N:
        out = out[:, :, :N]
    return out.reshape(B, 3, H, W)


def init_params(key):
    """Weights in the Conv1d(k=1) orientation (out_ch, in_ch). Matmul operands
    stored in bf16; biases (and accumulation) in f32."""
    ks = jax.random.split(key, 6)
    s = 0.1
    return {
        "w1": (s * jax.random.normal(ks[0], (16, 32), jnp.float32)).astype(jnp.bfloat16),
        "b1": s * jax.random.normal(ks[1], (16, 1), jnp.float32),
        "w2": (s * jax.random.normal(ks[2], (8, 16), jnp.float32)).astype(jnp.bfloat16),
        "b2": s * jax.random.normal(ks[3], (8, 1), jnp.float32),
        "w3": (s * jax.random.normal(ks[4], (3, 8), jnp.float32)).astype(jnp.bfloat16),
        "b3": s * jax.random.normal(ks[5], (3, 1), jnp.float32),
    }


def _reference(features, mask, params, out_dtype):
    """Pure-JAX mirror of the original module order (mask BEFORE nocs_net;
    bf16 matmul operands, f32 accumulate).  Exactly matches the kernel's
    mask-after-matmul form for binary masks."""
    B, C, H, W = features.shape
    N = H * W
    x = (features.reshape(B, C, N).astype(jnp.bfloat16)
         * mask.reshape(B, 1, N).astype(jnp.bfloat16))
    h1 = jnp.einsum("oc,bcn->bon", params["w1"], x,
                    preferred_element_type=jnp.float32) + params["b1"][None]
    h1 = jax.nn.relu(h1).astype(jnp.bfloat16)
    h2 = jnp.einsum("oc,bcn->bon", params["w2"], h1,
                    preferred_element_type=jnp.float32) + params["b2"][None]
    h2 = jax.nn.relu(h2).astype(jnp.bfloat16)
    o = jnp.einsum("oc,bcn->bon", params["w3"], h2,
                   preferred_element_type=jnp.float32) + params["b3"][None]
    return o.astype(out_dtype).astype(jnp.float32).reshape(B, 3, H, W)


if __name__ == "__main__":
    key = jax.random.PRNGKey(0)
    k_feat, k_mask, k_p = jax.random.split(key, 3)
    B, C, H, W = 2, 32, 16, 16
    # Backbone output streamed in bf16; mask in a narrow (bf16) binary form.
    features = jax.random.normal(k_feat, (B, C, H, W), jnp.float32).astype(jnp.bfloat16)
    mask = (jax.random.uniform(k_mask, (B, H, W)) > 0.3).astype(jnp.bfloat16)
    params = init_params(k_p)

    out = jax.block_until_ready(nocs_head(features, mask, params))
    ref = _reference(features, mask, params, out.dtype)

    assert out.shape == (B, 3, H, W)
    err = float(jnp.max(jnp.abs(out.astype(jnp.float32) - ref)))
    assert err < 1e-3, f"max abs err {err}"
    print("KERNEL_OK")
</pallas_src>

<mosaic_0001>
module attributes {stable_mosaic.version = 11 : i64} {
  func.func @_nocs_head_kernel(%arg0: i32, %arg1: i32, %arg2: memref<1x32x256xbf16, #tpu.memory_space<vmem>>, %arg3: memref<1x1x256xbf16, #tpu.memory_space<vmem>>, %arg4: memref<16x32xbf16, #tpu.memory_space<vmem>>, %arg5: memref<16x1xf32, #tpu.memory_space<vmem>>, %arg6: memref<8x16xbf16, #tpu.memory_space<vmem>>, %arg7: memref<8x1xf32, #tpu.memory_space<vmem>>, %arg8: memref<3x8xbf16, #tpu.memory_space<vmem>>, %arg9: memref<3x1xf32, #tpu.memory_space<vmem>>, %arg10: memref<1x3x256xbf16, #tpu.memory_space<vmem>>) attributes {dimension_semantics = [#tpu.dimension_semantics<parallel>, #tpu.dimension_semantics<parallel>], iteration_bounds = array<i64: 2, 1>, scalar_prefetch = 0 : i64, scratch_operands = 0 : i64, tpu.core_type = #tpu.core_type<tc>, window_params = [{transform_indices = @transform_0, window_bounds = array<i64: 1, 32, 256>}, {transform_indices = @transform_1, window_bounds = array<i64: 1, 1, 256>}, {pipeline_mode = #tpu.pipeline_mode<synchronous>, transform_indices = @transform_2, window_bounds = array<i64: 16, 32>}, {pipeline_mode = #tpu.pipeline_mode<synchronous>, transform_indices = @transform_3, window_bounds = array<i64: 16, 1>}, {pipeline_mode = #tpu.pipeline_mode<synchronous>, transform_indices = @transform_4, window_bounds = array<i64: 8, 16>}, {pipeline_mode = #tpu.pipeline_mode<synchronous>, transform_indices = @transform_5, window_bounds = array<i64: 8, 1>}, {pipeline_mode = #tpu.pipeline_mode<synchronous>, transform_indices = @transform_6, window_bounds = array<i64: 3, 8>}, {pipeline_mode = #tpu.pipeline_mode<synchronous>, transform_indices = @transform_7, window_bounds = array<i64: 3, 1>}, {transform_indices = @transform_8, window_bounds = array<i64: 1, 3, 256>}]} {
    %c0 = arith.constant 0 : index
    %c0_0 = arith.constant 0 : index
    %c0_1 = arith.constant 0 : index
    %0 = vector.load %arg2[%c0, %c0_0, %c0_1] : memref<1x32x256xbf16, #tpu.memory_space<vmem>>, vector<1x32x256xbf16>
    %1 = vector.shape_cast %0 : vector<1x32x256xbf16> to vector<32x256xbf16>
    %c0_2 = arith.constant 0 : index
    %c0_3 = arith.constant 0 : index
    %c0_4 = arith.constant 0 : index
    %2 = vector.load %arg3[%c0_2, %c0_3, %c0_4] : memref<1x1x256xbf16, #tpu.memory_space<vmem>>, vector<1x1x256xbf16>
    %3 = vector.shape_cast %2 : vector<1x1x256xbf16> to vector<1x256xbf16>
    %4 = arith.extf %3 : vector<1x256xbf16> to vector<1x256xf32>
    %c0_5 = arith.constant 0 : index
    %c0_6 = arith.constant 0 : index
    %5 = vector.load %arg4[%c0_5, %c0_6] : memref<16x32xbf16, #tpu.memory_space<vmem>>, vector<16x32xbf16>
    %cst = arith.constant dense<0.000000e+00> : vector<16x256xf32>
    %6 = tpu.matmul %5, %1, %cst {dimension_numbers = #tpu.dot_dimension_numbers<[1], [0], [0], [1], [0, 0, 1, 1], [], []>} : vector<16x32xbf16>, vector<32x256xbf16>, vector<16x256xf32> -> vector<16x256xf32>
    %7 = vector.broadcast %4 : vector<1x256xf32> to vector<16x256xf32>
    %8 = arith.mulf %6, %7 : vector<16x256xf32>
    %c0_7 = arith.constant 0 : index
    %c0_8 = arith.constant 0 : index
    %9 = vector.load %arg5[%c0_7, %c0_8] : memref<16x1xf32, #tpu.memory_space<vmem>>, vector<16x1xf32>
    %10 = vector.broadcast %9 : vector<16x1xf32> to vector<16x256xf32>
    %11 = arith.addf %8, %10 : vector<16x256xf32>
    %cst_9 = arith.constant 0.000000e+00 : f32
    %12 = vector.broadcast %cst_9 : f32 to vector<16x256xf32>
    %13 = arith.maximumf %11, %12 : vector<16x256xf32>
    %14 = arith.truncf %13 : vector<16x256xf32> to vector<16x256xbf16>
    %c0_10 = arith.constant 0 : index
    %c0_11 = arith.constant 0 : index
    %15 = vector.load %arg6[%c0_10, %c0_11] : memref<8x16xbf16, #tpu.memory_space<vmem>>, vector<8x16xbf16>
    %cst_12 = arith.constant dense<0.000000e+00> : vector<8x256xf32>
    %16 = tpu.matmul %15, %14, %cst_12 {dimension_numbers = #tpu.dot_dimension_numbers<[1], [0], [0], [1], [0, 0, 1, 1], [], []>} : vector<8x16xbf16>, vector<16x256xbf16>, vector<8x256xf32> -> vector<8x256xf32>
    %c0_13 = arith.constant 0 : index
    %c0_14 = arith.constant 0 : index
    %17 = vector.load %arg7[%c0_13, %c0_14] : memref<8x1xf32, #tpu.memory_space<vmem>>, vector<8x1xf32>
    %18 = vector.broadcast %17 : vector<8x1xf32> to vector<8x256xf32>
    %19 = arith.addf %16, %18 : vector<8x256xf32>
    %cst_15 = arith.constant 0.000000e+00 : f32
    %20 = vector.broadcast %cst_15 : f32 to vector<8x256xf32>
    %21 = arith.maximumf %19, %20 : vector<8x256xf32>
    %22 = arith.truncf %21 : vector<8x256xf32> to vector<8x256xbf16>
    %c0_16 = arith.constant 0 : index
    %c0_17 = arith.constant 0 : index
    %23 = vector.load %arg8[%c0_16, %c0_17] : memref<3x8xbf16, #tpu.memory_space<vmem>>, vector<3x8xbf16>
    %cst_18 = arith.constant dense<0.000000e+00> : vector<3x256xf32>
    %24 = tpu.matmul %23, %22, %cst_18 {dimension_numbers = #tpu.dot_dimension_numbers<[1], [0], [0], [1], [0, 0, 1, 1], [], []>} : vector<3x8xbf16>, vector<8x256xbf16>, vector<3x256xf32> -> vector<3x256xf32>
    %c0_19 = arith.constant 0 : index
    %c0_20 = arith.constant 0 : index
    %25 = vector.load %arg9[%c0_19, %c0_20] : memref<3x1xf32, #tpu.memory_space<vmem>>, vector<3x1xf32>
    %26 = vector.broadcast %25 : vector<3x1xf32> to vector<3x256xf32>
    %27 = arith.addf %24, %26 : vector<3x256xf32>
    %28 = arith.truncf %27 : vector<3x256xf32> to vector<3x256xbf16>
    %c0_21 = arith.constant 0 : index
    %c0_22 = arith.constant 0 : index
    %c0_23 = arith.constant 0 : index
    %29 = vector.load %arg10[%c0_21, %c0_22, %c0_23] : memref<1x3x256xbf16, #tpu.memory_space<vmem>>, vector<1x3x256xbf16>
    %30 = vector.shape_cast %29 : vector<1x3x256xbf16> to vector<3x256xbf16>
    %31 = vector.shape_cast %28 : vector<3x256xbf16> to vector<1x3x256xbf16>
    tpu.vector_store %arg10[%c0_21, %c0_22, %c0_23], %31 {strides = array<i32>} : memref<1x3x256xbf16, #tpu.memory_space<vmem>>, vector<1x3x256xbf16>,
    return
  }
  func.func @transform_0(%arg0: i32, %arg1: i32) -> (i32, i32, i32) {
    %c0_i32 = arith.constant 0 : i32
    %c0_i32_0 = arith.constant 0 : i32
    return %arg0, %c0_i32, %arg1 : i32, i32, i32
  }
  func.func @transform_1(%arg0: i32, %arg1: i32) -> (i32, i32, i32) {
    %c0_i32 = arith.constant 0 : i32
    %c0_i32_0 = arith.constant 0 : i32
    return %arg0, %c0_i32, %arg1 : i32, i32, i32
  }
  func.func @transform_2(%arg0: i32, %arg1: i32) -> (i32, i32) {
    %c0_i32 = arith.constant 0 : i32
    %c0_i32_0 = arith.constant 0 : i32
    %c0_i32_1 = arith.constant 0 : i32
    return %c0_i32, %c0_i32_0 : i32, i32
  }
  func.func @transform_3(%arg0: i32, %arg1: i32) -> (i32, i32) {
    %c0_i32 = arith.constant 0 : i32
    %c0_i32_0 = arith.constant 0 : i32
    %c0_i32_1 = arith.constant 0 : i32
    return %c0_i32, %c0_i32_0 : i32, i32
  }
  func.func @transform_4(%arg0: i32, %arg1: i32) -> (i32, i32) {
    %c0_i32 = arith.constant 0 : i32
    %c0_i32_0 = arith.constant 0 : i32
    %c0_i32_1 = arith.constant 0 : i32
    return %c0_i32, %c0_i32_0 : i32, i32
  }
  func.func @transform_5(%arg0: i32, %arg1: i32) -> (i32, i32) {
    %c0_i32 = arith.constant 0 : i32
    %c0_i32_0 = arith.constant 0 : i32
    %c0_i32_1 = arith.constant 0 : i32
    return %c0_i32, %c0_i32_0 : i32, i32
  }
  func.func @transform_6(%arg0: i32, %arg1: i32) -> (i32, i32) {
    %c0_i32 = arith.constant 0 : i32
    %c0_i32_0 = arith.constant 0 : i32
    %c0_i32_1 = arith.constant 0 : i32
    return %c0_i32, %c0_i32_0 : i32, i32
  }
  func.func @transform_7(%arg0: i32, %arg1: i32) -> (i32, i32) {
    %c0_i32 = arith.constant 0 : i32
    %c0_i32_0 = arith.constant 0 : i32
    %c0_i32_1 = arith.constant 0 : i32
    return %c0_i32, %c0_i32_0 : i32, i32
  }
  func.func @transform_8(%arg0: i32, %arg1: i32) -> (i32, i32, i32) {
    %c0_i32 = arith.constant 0 : i32
    %c0_i32_0 = arith.constant 0 : i32
    return %arg0, %c0_i32, %arg1 : i32, i32, i32
  }
}

</mosaic_0001>

<bundles_post_ra>
// kernel: tpu_custom_call.1
= control target key start
LH: loop header
LB: loop body
LE: loop exit
PB: predicated region body
PF: predicated region fallthrough
CT: control target
= control target key end

     0   :  { %13 = vsyncpa [#allocation3], 0  ;;  %s1149_s0 = inlined_call_operand.hbm [shape: bf16[2,32,256], index: 0, kind: input, shape index: {}]   ;;  %s1150_s1 = inlined_call_operand.vmem [shape: bf16[2,1,256], index: 1, kind: input, shape index: {}]   ;;  %s1151_s2 = inlined_call_operand.vmem [shape: bf16[16,32], index: 2, kind: input, shape index: {}]   ;;  %s1152_s3 = inlined_call_operand.vmem [shape: f32[16,1], index: 3, kind: input, shape index: {}]   ;;  %s1153_s4 = inlined_call_operand.vmem [shape: bf16[8,16], index: 4, kind: input, shape index: {}]   ;;  %s1154_s5 = inlined_call_operand.vmem [shape: f32[8,1], index: 5, kind: input, shape index: {}]   ;;  %s1155_s6 = inlined_call_operand.vmem [shape: bf16[3,8], index: 6, kind: input, shape index: {}]   ;;  %s1156_s7 = inlined_call_operand.vmem [shape: f32[3,1], index: 7, kind: input, shape index: {}]   ;;  %s1157_s8 = inlined_call_operand.vmem [shape: bf16[2,3,256], index: 8, kind: output, shape index: {}]  }
   0x1   :  { %15 = vsyncpa [#allocation3 + $0x1], 0  ;;  %s987_s27 = smov 0   ;;  %s989_s28 = smov 0  }
   0x2   :  { %s991_s29 = smov 0   ;;  %s993_s30 = smov 0  }
   0x3   :  { %s995_s9 = smov 0   ;;  %s997_s10 = smov 0  }
   0x4 LB: > { %s761_s11 = sadd.s32 4294967295, %s935_s10   ;;  %s33_s12 = sadd.s32 1, %s931_s9  ;;  %s935_s10 = sphi %s997_s10, %s21_s10   ;;  %s931_s9 = sphi %s995_s9, %s1165_s9   ;;  %s927_s30 = sphi %s993_s30, %s1164_s30   ;;  %s923_s29 = sphi %s991_s29, %s1163_s29   ;;  %s919_s28 = sphi %s989_s28, %s1162_s28   ;;  %s915_s27 = sphi %s987_s27, %s1161_s27  }
   0x5   : > { %p35_p0 = scmp.ge.s32.totalorder %s33_s12, 2  ;;  %s42_s13 = sadd.s32 1, %s923_s29 }
   0x6   : > { %p49_p1 = scmp.ne.s32.totalorder %s923_s29, %s919_s28  ;;  %p50_p2 = scmp.eq.s32.totalorder %s935_s10, 0 }
   0x7   : > { %s1167_s12 = smov (%p35_p0, %s33_s12), 0  ;;  %p55_p4 = scmp.ne.s32.totalorder %s919_s28, %s915_s27 }
   0x8   : > { %p1023_p3 = por %p50_p2, %p49_p1  ;;  %s37_s15 = ssub.s32 %s931_s9, %s1167_s12 }
   0x9   : > { %p56_p5 = scmp.eq.s32.totalorder %s761_s11, 0  ;;  %p40_p6 = scmp.eq.s32.totalorder %s37_s15, 0 }
   0xa   : > { %p793_p8 = scmp.lt.s32.totalorder %s935_s10, 2  ;;  %s279_s18 = sand.u32 1, %s923_s29  }
   0xb   : > { %p1030_p7 = por %p56_p5, %p55_p4  ;;  %s785_s19 = sshll.u32 %s931_s9, 9 }
   0xc   : > { %s1036_s17 = scalar_select %p40_p6, %s923_s29, %s42_s13  }
   0xd   : > { %s765_s20 = sshll.u32 %s279_s18, 5  ;;  %s1043_s23 = scalar_lea.hbm %s1149_s0, %s785_s19 }
   0xe   : > { %s283_s24 = scalar_lea.vmem [#allocation2], %s765_s20  ;;  %p1047_p9 = pnand %p793_p8, %p1023_p3 }
   0xf   : > { %s292_s25 = sshll.u32 %s283_s24, 4  ;;  %s1053_s27 = scalar_lea.sflag [#allocation3], %s279_s18  ;;  %s1051_s25 = int_to_ptr.vmem [resolvable:$true] %s292_s25 }
  0x10   : > { %s855_s11 = scalar_lea.hbm %s1043_s23, 512  ;;  %p857_p11 = pneg %p1047_p9 }
  0x11   : > { %p856_p10 = scmp.ne.s32.totalorder %s1043_s23, %s855_s11  ;;  %s860_s15 = scalar_lea.hbm %s1149_s0, 1024 }
  0x12   : > { %p861_p0 = scmp.lt.u32.totalorder %s1043_s23, %s1149_s0  ;;  %p862_p1 = scmp.lt.u32.totalorder %s860_s15, %s855_s11 }
  0x13   : > { %p858_p12 = pnand %p857_p11, %p856_p10  ;;  %p864_p3 = scmp.lt.u32.totalorder %s855_s11, %s1043_s23 }
  0x14   : > { %p863_p2 = por %p862_p1, %p861_p0 }
  0x15   : > { %p859_p13 = pneg %p858_p12 }
  0x16   : > { %p865_p4 = por %p864_p3, %p863_p2 }
  0x18   : > { %p866_p5 = pnand %p865_p4, %p859_p13 }
  0x1a   : > { %869 = shalt.err (!%p866_p5)
}
  0x1b   : > { %s870_s18 = scalar_lea.vmem %s1051_s25, 512  ;;  %s937_s21 = smov [#allocation2]  }
  0x1c   : > { %p871_p6 = scmp.ne.s32.totalorder %s1051_s25, %s870_s18  ;;  %s875_s22 = sshll.u32 %s937_s21, 4  ;;  %s876_s22 = int_to_ptr.vmem [resolvable:$false] %s875_s22 }
  0x1d   : > { %s877_s24 = scalar_lea.vmem %s876_s22, 1024  ;;  %p878_p12 = scmp.lt.s32.totalorder %s1051_s25, %s876_s22 }
  0x1e   : > { %p873_p8 = pnand %p871_p6, %p857_p11  ;;  %p879_p0 = scmp.lt.s32.totalorder %s877_s24, %s870_s18 }
  0x20   : > { %p874_p10 = pneg %p873_p8  ;;  %p880_p1 = por %p879_p0, %p878_p12 }
  0x22   : > { %p881_p2 = pnand %p880_p1, %p874_p10 }
  0x24   : > { %884 = shalt.err (!%p881_p2)
}
  0x25   : > { %s938_s11 = smov 128   ;;  %s939_s13 = smov 8  }
  0x26   : > { %792 = dma.hbm_to_vmem [thread:$0]  (!%p1047_p9), %s1043_s23, 512, %s1051_s25, %s1053_s27, %s938_s11, %s938_s11, %s939_s13  }
  0x27   : > { %p768_p11 = scmp.ge.s32.totalorder %s935_s10, 1  ;;  %p312_p13 = scmp.lt.s32.totalorder %s935_s10, 3 }
  0x29   : > { %p313_p3 = pnand %p768_p11, %p312_p13 }
  0x2a   : > { %s318_s14 = sand.u32 (!%p313_p3), 1, %s919_s28  }
  0x2b   : > { %316 = sbr.rel (%p313_p3) target bundleno = 733 (0x2dd), region = 52  ;;  %s769_s15 = sshll.u32 (!%p313_p3), %s318_s14, 5 }
  0x2c   : > { %s319_s19 = scalar_lea.sflag (!%p313_p3), [#allocation3], %s318_s14  ;;  %s322_s20 = scalar_lea.vmem (!%p313_p3), [#allocation2], %s769_s15 }
  0x32   : > { %910 = dma.done.wait (%p1030_p7), %s319_s19, 512  }
  0x33   : > { %912 = vsyncadd (%p1030_p7), %s319_s19, 4294966784  ;;  %v940_v0 = vmov 0   ;;  %v848_v1 = vld [vmem:[%s322_s20 + $0x4] ss:$8 sps:$4 sm:$0xff]   ;;  %v850_v2 = vld [vmem:[%s322_s20] ss:$8 sps:$4 sm:$0xff]   ;;  %v469_v10 = vlaneseq }
  0x34   : > { %457 = vmatprep.mubr.bf16.mxu0 %v940_v0  ;;  %846 = vset.pattern.permute.xlu0 %v940_v0  ;;  %v851_v3 = vld [vmem:[%s322_s20 + $0x14] ss:$8 sps:$4 sm:$0xff]   ;;  %v853_v4 = vld [vmem:[%s322_s20 + $0x10] ss:$8 sps:$4 sm:$0xff]   ;;  %v491_v5 = vld [vmem:[%s1152_s3] sm:$0xff]  ;;  %vm421_vm0 = vcmask 261120  }
  0x35   : > { %556 = vmatprep.mubr.bf16.mxu1 %v940_v0  ;;  %847 = vset.pattern.permute.xlu1 %v940_v0  ;;  %v492_v6 = vld [vmem:[%s1152_s3 + $0x8] sm:$0xff]  ;;  %v854_v7 = vld [vmem:[%s1151_s2] sm:$0xff]   ;;  %p369_p7 = scmp.lt.s32.totalorder %s927_s30, 1  ;;  %v1115_v11 = vshrl.u32 %v469_v10, 7  ;;  %vm520_vm1 = vcmask 130048   ;;  %vm580_vm2 = vcmask 1043456  }
  0x36   : > { %425 = vmatprep.subr.bf16.mxu0 %v848_v1  ;;  %495 = vperm.xlu0 %846, %v491_v5   ;;  %v514_v8 = vld [vmem:[%s1154_s5] sm:$0xff]  ;;  %vm576_vm3 = vcmask 64512   ;;  %v941_v54 = vmov 1983009808   ;;  %vm641_vm4 = vcmask 1041408   ;;  %vm644_vm6 = vcmask 1043458  }
  0x37   : > { %426 = vmatpush1.bf16.msra.mxu0 %v850_v2  ;;  %517 = vperm.xlu1 %847, %v514_v8   ;;  %v570_v9 = vld [vmem:[%s1156_s7] sm:$0x7]  ;;  %s1169_s30 = smov (!%p369_p7, %s927_s30), 1  ;;  %v471_v14 = vsub.s32 0, %v1115_v11  ;;  %v475_v15 = vsub.s32 2, %v1115_v11  ;;  %v634_v55 = vunpack.c.l.s4 %v941_v54 }
  0x38   : > { %427 = vmatprep.subr.bf16.mxu0 %v851_v3  ;;  %s770_s13 = sshll.u32 %s1169_s30, 1  ;;  %v513_v40 = vld [vmem:[%s1153_s4] sm:$0xf]  ;;  %vm642_vm5 = vsmask.f32 1280  ;;  %s786_s26 = sshll.u32 %s1169_s30, 2 }
  0x39   : > { %s375_s19 = scalar_lea.vmem %s1150_s1, %s770_s13  ;;  %v569_v53 = vld [vmem:[%s1155_s6] sm:$0x3]  ;;  %v635_v56 = vunpack.c.0.s8 %v634_v55  ;;  %vm645_vm7 = vsmask.f32 3328  ;;  %vm643_vm8 = vmand %vm641_vm4, %vm642_vm5  ;;  %s385_s21 = scalar_lea.vmem %s1157_s8, %s786_s26 }
  0x3a   : > { %500 = vperm.xlu0 %846, %v492_v6   ;;  %v392_v12 = vld [vmem:[%s375_s19] sm:$0x3]  ;;  %vm646_vm9 = vmand %vm644_vm6, %vm645_vm7 }
  0x3b   : > { %428 = vmatpush1.bf16.msra.mxu0 %v853_v4  ;;  %573 = vperm.xlu1 %847, %v570_v9   ;;  %v393_v13 = vunpack.c.l.bf16 %v392_v12  ;;  %v638_v62 = vsub.s32 %v635_v56, %v1115_v11  ;;  %vm647_vm10 = vmor %vm646_vm9, %vm643_vm8  ;;  %v648_v2 = vld [vmem:[%s385_s21] sm:$0xf] }
  0x3d   : > { %v472_v16 = vrot.slane %v393_v13, %v471_v14  ;;  %v476_v17 = vrot.slane %v393_v13, %v475_v15 }
  0x3e   : > { %778 = vmatmul.mubr.msk.bf16.vlgmr.msra.gmra.mrb[0].mxu0 %vm421_vm0, %v854_v7 }
  0x3f   : > { %v482_v18 = vrot.slane %v472_v16, %v471_v14  ;;  %v486_v20 = vrot.slane %v476_v17, %v471_v14 }
  0xb5   : > { %v496_v19 = vpop.permute.xlu0 %495 }
  0xb6   : > { %v518_v41 = vpop.permute.xlu1 %517 }
  0xb9   : > { %v501_v29 = vpop.permute.xlu0 %500 }
  0xba   : > { %v574_v57 = vpop.permute.xlu1 %573 }
 0x111   : > { %v459_v21 = vpop.f32.mrb[0].mxu0 }
 0x112   : > { %v487_v22 = vmul.f32 %v482_v18, %v459_v21  ;;  %v461_v23 = vpop.f32.mrb[1].mxu0 }
 0x113   : > { %v488_v24 = vmul.f32 %v486_v20, %v461_v23  ;;  %v463_v25 = vpop.f32.mrb[2].mxu0 }
 0x114   : > { %v503_v26 = vadd.f32 %v496_v19, %v487_v22  ;;  %v489_v27 = vmul.f32 %v482_v18, %v463_v25  ;;  %v465_v28 = vpop.f32.mrb[3].mxu0 }
 0x115   : > { %v490_v30 = vmul.f32 %v486_v20, %v465_v28  ;;  %v504_v31 = vadd.f32 %v496_v19, %v488_v24 }
 0x116   : > { %v505_v32 = vadd.f32 %v501_v29, %v489_v27  ;;  %v507_v34 = vmax.f32 %v503_v26, 0.0 }
 0x117   : > { %v506_v33 = vadd.f32 %v501_v29, %v490_v30  ;;  %v508_v36 = vmax.f32 %v504_v31, 0.0 }
 0x118   : > { %v509_v35 = vmax.f32 %v505_v32, 0.0 }
 0x119   : > { %v510_v37 = vmax.f32 %v506_v33, 0.0 }
 0x11a   : > { %v511_v38 = vpack.c.bf16 %v509_v35, %v507_v34 }
 0x11b   : > { %v512_v39 = vpack.c.bf16 %v510_v37, %v508_v36 }
 0x11d   : > { %524 = vmatprep.subr.bf16.mxu1 %v512_v39 }
 0x11e   : > { %525 = vmatpush1.bf16.msra.mxu1 %v511_v38 }
 0x121   : > { %779 = vmatmul.mubr.msk.bf16.vlgmr.msra.gmra.mrb[0].mxu1 %vm520_vm1, %v513_v40 }
 0x122   : > { %619 = vmatprep.mubr.bf16.mxu1 %v940_v0 }
 0x1f4   : > { %v558_v42 = vpop.f32.mrb[0].mxu1 }
 0x1f5   : > { %v559_v43 = vadd.f32 %v558_v42, %v518_v41  ;;  %v560_v44 = vpop.f32.mrb[1].mxu1 }
 0x1f6   : > { %v561_v45 = vadd.f32 %v560_v44, %v518_v41  ;;  %v562_v46 = vpop.f32.mrb[2].mxu1 }
 0x1f7   : > { %v565_v47 = vmax.f32 %v559_v43, 0.0  ;;  %v563_v48 = vpop.f32.mrb[3].mxu1 }
 0x1f8   : > { %v566_v49 = vmax.f32 %v561_v45, 0.0 }
 0x1f9   : > { %v567_v50 = vpack.c.bf16 %v565_v47, %v565_v47 }
 0x1fa   : > { %v568_v51 = vpack.c.bf16 %v566_v49, %v566_v49 }
 0x1fb   : > { %v582_v52 = vsel %vm580_vm2, %v567_v50, 0 }
 0x1fc   : > { %780 = vmatprep.subr.msk.bf16.mxu1 %vm580_vm2, %v568_v51 }
 0x1fd   : > { %588 = vmatpush1.bf16.msra.mxu1 %v582_v52 }
 0x200   : > { %781 = vmatmul.mubr.msk.bf16.vlgmr.msra.gmra.mrb[4].mxu1 %vm576_vm3, %v569_v53 }
 0x2d3   : > { %v621_v58 = vpop.f32.mrb[4].mxu1 }
 0x2d4   : > { %v622_v59 = vadd.f32 %v621_v58, %v574_v57  ;;  %v623_v60 = vpop.f32.mrb[5].mxu1 }
 0x2d5   : > { %v624_v61 = vadd.f32 %v623_v60, %v574_v57  ;;  %v625_v63 = vpop.f32.mrb[6].mxu1 }
 0x2d6   : > { %v626_v0 = vpop.f32.mrb[7].mxu1 }
 0x2d7   : > { %v782_v1 = vpack.c.bf16 %v624_v61, %v622_v59 }
 0x2d9   : > { %v639_v3 = vrot.slane %v782_v1, %v638_v62 }
 0x2db   : > { %v649_v4 = vsel %vm647_vm10, %v639_v3, %v648_v2 }
 0x2dc   : > { %650 = vst [vmem:[%s385_s21] sm:$0xf] %v649_v4 }
 0x2dd PF: > { %s21_s10 = sadd.s32 1, %s935_s10   ;;  %s1161_s27 = smov %s919_s28 }
 0x2de   : > { %p18_p9 = scmp.ge.s32.totalorder %s21_s10, 4   ;;  %s1162_s28 = smov %s923_s29 }
 0x2df   : > { %s1163_s29 = smov %s1036_s17  ;;  %s1164_s30 = smov %s931_s9 }
 0x2e0   : > { %s1165_s9 = smov %s1167_s12  ;;  %20 = sbr.rel (!%p18_p9) target bundleno = 4 (0x4), region = 95 }
 0x2e7   :  { %681 = vsyncpa [#allocation3], 1 }
 0x2e8   :  { %683 = vsyncpa [#allocation3 + $0x1], 1 }

</bundles_post_ra>
